<compile_context>
chip_gen: v7x
topology: tpu7x:2x2x1
jax: 0.10.0
libtpu: 0.0.40
codegen_flags: <defaults>
</compile_context>

<pallas_src>
import math

import jax
import jax.numpy as jnp
from jax import lax
from jax.experimental import pallas as pl
from jax.experimental.pallas import tpu as pltpu

# ----------------------------- model config ---------------------------------
SEQ = 8        # L
BATCH = 2      # N
D_MODEL = 32   # D
NHEAD = 4      # H
DHEAD = D_MODEL // NHEAD  # dh


# --------------------------- fused Pallas kernel -----------------------------
def _make_fused_mha_kernel(L, N, D, H, DH):
    """Kernel closure built from the actual call-time shapes (no silent
    mis-slicing if shapes ever differ from the module-level defaults)."""

    def kernel(xq_ref, xk_ref, xv_ref, w_ref, b_ref, out_ref, wts_ref):
        # xq/xk/xv: (L*N, D) seq-major rows (row = l*N + n) — a FREE reshape of
        #           the (L, N, D) inputs; no wrapper-side transpose.
        # w_ref   : (4, D, D) = [W_q*scale, W_k, W_v, W_o]
        # b_ref   : (4, 1, D) = [b_q*scale, b_k, b_v, b_o]
        # out_ref : (N*L, D)  batch-major rows
        # wts_ref : (N*H*L, L) attention weights, row-major over (n, h, l)
        wq = w_ref[0]
        wk = w_ref[1]
        wv = w_ref[2]
        wo = w_ref[3]
        bq = b_ref[0]
        bk = b_ref[1]
        bv = b_ref[2]
        bo = b_ref[3]

        # Fully unrolled (N, H) loops: tiny problems, no grid-step overhead.
        for n in range(N):
            # Strided sublane loads pick batch n's L rows straight out of the
            # seq-major layout (replaces the three wrapper transposes).
            xq_n = xq_ref[pl.ds(n, L, stride=N), :]      # (L, D)
            xk_n = xk_ref[pl.ds(n, L, stride=N), :]
            xv_n = xv_ref[pl.ds(n, L, stride=N), :]

            # Separate per-stream projections (scale folded into wq/bq).
            q_n = jnp.dot(xq_n, wq, preferred_element_type=jnp.float32) + bq
            k_n = jnp.dot(xk_n, wk, preferred_element_type=jnp.float32) + bk
            v_n = jnp.dot(xv_n, wv, preferred_element_type=jnp.float32) + bv

            acc = None  # output-projection accumulator, (L, D)
            for h in range(H):
                qh = q_n[:, h * DH:(h + 1) * DH]         # (L, DH)
                kh = k_n[:, h * DH:(h + 1) * DH]
                vh = v_n[:, h * DH:(h + 1) * DH]
                # q @ k^T without materializing a transpose.
                s = lax.dot_general(qh, kh, (((1,), (1,)), ((), ())),
                                    preferred_element_type=jnp.float32)  # (L, L)
                m = jnp.max(s, axis=-1, keepdims=True)
                e = jnp.exp(s - m)
                p = e / jnp.sum(e, axis=-1, keepdims=True)   # exact softmax
                # Direct sublane-aligned store of this head's weights.
                r0 = (n * H + h) * L
                wts_ref[r0:r0 + L, :] = p.astype(wts_ref.dtype)
                ctx = jnp.dot(p, vh, preferred_element_type=jnp.float32)  # (L, DH)
                # Fold the head concat into the output projection:
                # accumulate ctx_h @ W_o[h*DH:(h+1)*DH, :].
                contrib = jnp.dot(ctx, wo[h * DH:(h + 1) * DH, :],
                                  preferred_element_type=jnp.float32)     # (L, D)
                acc = contrib if acc is None else acc + contrib
            out_ref[n * L:(n + 1) * L, :] = (acc + bo).astype(out_ref.dtype)

    return kernel


# ----------------------------- forward pass ----------------------------------
def model_forward(params, query, key, value, attention_mask=None, head_mask=None):
    """query/key/value: (L, N, D). Returns ((N, L, D), (N, H, L, L))."""
    # TODO(synk): attention_mask / head_mask are accepted but never applied by
    # the (non-runnable) reference module's visible code path; ignored here.
    L, N, D = query.shape
    H = NHEAD
    assert D % H == 0, "d_model must be divisible by nhead"
    DH = D // H
    assert params["w"].shape == (4, D, D), "packed weight slab shape mismatch"
    assert params["b"].shape == (4, 1, D), "packed bias slab shape mismatch"

    # Free metadata reshapes (no transpose, no extra XLA copy kernels).
    xq = query.reshape(L * N, D)
    xk = key.reshape(L * N, D)
    xv = value.reshape(L * N, D)

    vmem = pl.BlockSpec(memory_space=pltpu.MemorySpace.VMEM)
    out2d, w2d = pl.pallas_call(
        _make_fused_mha_kernel(L, N, D, H, DH),
        out_shape=(
            jax.ShapeDtypeStruct((N * L, D), query.dtype),
            jax.ShapeDtypeStruct((N * H * L, L), jnp.float32),
        ),
        in_specs=[vmem] * 5,
        out_specs=(vmem, vmem),
    )(xq, xk, xv, params["w"], params["b"])

    attn_output = out2d.reshape(N, L, D)          # free metadata reshape
    attn_weights = w2d.reshape(N, H, L, L)        # free metadata reshape
    return attn_output, attn_weights


# ----------------------------- parameters ------------------------------------
def init_params(key):
    ks = jax.random.split(key, 8)

    def lin(kw, kb, din, dout):
        w = jax.random.normal(kw, (din, dout), jnp.float32) / math.sqrt(din)
        b = jax.random.normal(kb, (dout,), jnp.float32) * 0.01
        return w, b

    wq, bq = lin(ks[0], ks[1], D_MODEL, D_MODEL)
    wk, bk = lin(ks[2], ks[3], D_MODEL, D_MODEL)
    wv, bv = lin(ks[4], ks[5], D_MODEL, D_MODEL)
    wo, bo = lin(ks[6], ks[7], D_MODEL, D_MODEL)

    scale = 1.0 / math.sqrt(DHEAD)
    fused = {
        # scale folded into the W_q / b_q slices at parameter setup; all
        # weights/biases packed into single slabs (fewer kernel inputs/DMAs).
        "w": jnp.stack([wq * scale, wk, wv, wo]),                     # (4, D, D)
        "b": jnp.stack([bq * scale, bk, bv, bo]).reshape(4, 1, D_MODEL),
    }
    raw = {"wq": wq, "bq": bq, "wk": wk, "bk": bk,
           "wv": wv, "bv": bv, "wo": wo, "bo": bo}
    return fused, raw


# ------------------------- pure-JAX reference ---------------------------------
def reference_forward(raw, query, key, value):
    L, N, D = query.shape
    H, DH = NHEAD, DHEAD
    scale = 1.0 / math.sqrt(DH)
    hp = jax.lax.Precision.HIGHEST

    def proj(x, w, b):
        return jnp.einsum("lnd,de->lne", x, w, precision=hp) + b

    q = proj(query, raw["wq"], raw["bq"]) * scale
    k = proj(key, raw["wk"], raw["bk"])
    v = proj(value, raw["wv"], raw["bv"])

    def split_heads(x):  # (L, N, D) -> (N, H, L, DH)
        return x.transpose(1, 0, 2).reshape(N, L, H, DH).transpose(0, 2, 1, 3)

    qh, kh, vh = split_heads(q), split_heads(k), split_heads(v)
    s = jnp.einsum("nhld,nhmd->nhlm", qh, kh, precision=hp)
    p = jax.nn.softmax(s, axis=-1)
    ctx = jnp.einsum("nhlm,nhmd->nhld", p, vh, precision=hp)
    ctx = ctx.transpose(0, 2, 1, 3).reshape(N, L, D)
    out = jnp.einsum("nld,de->nle", ctx, raw["wo"], precision=hp) + raw["bo"]
    return out, p


# --------------------------------- main ---------------------------------------
if __name__ == "__main__":
    root = jax.random.PRNGKey(0)
    kp, kq, kk, kv = jax.random.split(root, 4)
    fused_params, raw_params = init_params(kp)

    query = jax.random.normal(kq, (SEQ, BATCH, D_MODEL), jnp.float32)
    key_in = jax.random.normal(kk, (SEQ, BATCH, D_MODEL), jnp.float32)
    value = jax.random.normal(kv, (SEQ, BATCH, D_MODEL), jnp.float32)

    fwd = jax.jit(model_forward)
    attn_output, attn_weights = fwd(fused_params, query, key_in, value)
    jax.block_until_ready((attn_output, attn_weights))

    assert attn_output.shape == (BATCH, SEQ, D_MODEL)
    assert attn_weights.shape == (BATCH, NHEAD, SEQ, SEQ)
    # exact softmax normalization -> tight row-sum check
    assert jnp.allclose(jnp.sum(attn_weights, axis=-1), 1.0, atol=1e-3)

    ref_out, ref_w = reference_forward(raw_params, query, key_in, value)
    # MXU matmul precision is the only remaining deviation source.
    assert jnp.allclose(attn_output, ref_out, rtol=2e-2, atol=2e-2)
    assert jnp.allclose(attn_weights, ref_w, rtol=2e-2, atol=2e-2)

    print("KERNEL_OK")
</pallas_src>

<mosaic_0001>
module attributes {stable_mosaic.version = 11 : i64} {
  func.func @kernel(%arg0: memref<16x32xf32, #tpu.memory_space<vmem>>, %arg1: memref<16x32xf32, #tpu.memory_space<vmem>>, %arg2: memref<16x32xf32, #tpu.memory_space<vmem>>, %arg3: memref<4x32x32xf32, #tpu.memory_space<vmem>>, %arg4: memref<4x1x32xf32, #tpu.memory_space<vmem>>, %arg5: memref<16x32xf32, #tpu.memory_space<vmem>>, %arg6: memref<64x8xf32, #tpu.memory_space<vmem>>) attributes {dimension_semantics = [], scalar_prefetch = 0 : i64, scratch_operands = 0 : i64, tpu.core_type = #tpu.core_type<tc>} {
    %c0 = arith.constant 0 : index
    %c0_0 = arith.constant 0 : index
    %c0_1 = arith.constant 0 : index
    %0 = vector.load %arg3[%c0, %c0_0, %c0_1] : memref<4x32x32xf32, #tpu.memory_space<vmem>>, vector<1x32x32xf32>
    %1 = vector.shape_cast %0 : vector<1x32x32xf32> to vector<32x32xf32>
    %c1 = arith.constant 1 : index
    %c0_2 = arith.constant 0 : index
    %c0_3 = arith.constant 0 : index
    %2 = vector.load %arg3[%c1, %c0_2, %c0_3] : memref<4x32x32xf32, #tpu.memory_space<vmem>>, vector<1x32x32xf32>
    %3 = vector.shape_cast %2 : vector<1x32x32xf32> to vector<32x32xf32>
    %c2 = arith.constant 2 : index
    %c0_4 = arith.constant 0 : index
    %c0_5 = arith.constant 0 : index
    %4 = vector.load %arg3[%c2, %c0_4, %c0_5] : memref<4x32x32xf32, #tpu.memory_space<vmem>>, vector<1x32x32xf32>
    %5 = vector.shape_cast %4 : vector<1x32x32xf32> to vector<32x32xf32>
    %c3 = arith.constant 3 : index
    %c0_6 = arith.constant 0 : index
    %c0_7 = arith.constant 0 : index
    %6 = vector.load %arg3[%c3, %c0_6, %c0_7] : memref<4x32x32xf32, #tpu.memory_space<vmem>>, vector<1x32x32xf32>
    %7 = vector.shape_cast %6 : vector<1x32x32xf32> to vector<32x32xf32>
    %c0_8 = arith.constant 0 : index
    %c0_9 = arith.constant 0 : index
    %c0_10 = arith.constant 0 : index
    %8 = vector.load %arg4[%c0_8, %c0_9, %c0_10] : memref<4x1x32xf32, #tpu.memory_space<vmem>>, vector<1x1x32xf32>
    %9 = vector.shape_cast %8 : vector<1x1x32xf32> to vector<1x32xf32>
    %c1_11 = arith.constant 1 : index
    %c0_12 = arith.constant 0 : index
    %c0_13 = arith.constant 0 : index
    %10 = vector.load %arg4[%c1_11, %c0_12, %c0_13] : memref<4x1x32xf32, #tpu.memory_space<vmem>>, vector<1x1x32xf32>
    %11 = vector.shape_cast %10 : vector<1x1x32xf32> to vector<1x32xf32>
    %c2_14 = arith.constant 2 : index
    %c0_15 = arith.constant 0 : index
    %c0_16 = arith.constant 0 : index
    %12 = vector.load %arg4[%c2_14, %c0_15, %c0_16] : memref<4x1x32xf32, #tpu.memory_space<vmem>>, vector<1x1x32xf32>
    %13 = vector.shape_cast %12 : vector<1x1x32xf32> to vector<1x32xf32>
    %c3_17 = arith.constant 3 : index
    %c0_18 = arith.constant 0 : index
    %c0_19 = arith.constant 0 : index
    %14 = vector.load %arg4[%c3_17, %c0_18, %c0_19] : memref<4x1x32xf32, #tpu.memory_space<vmem>>, vector<1x1x32xf32>
    %15 = vector.shape_cast %14 : vector<1x1x32xf32> to vector<1x32xf32>
    %c0_20 = arith.constant 0 : index
    %c0_21 = arith.constant 0 : index
    %16 = tpu.strided_load %arg0[%c0_20, %c0_21] {strides = array<i32: 2, 1>} : memref<16x32xf32, #tpu.memory_space<vmem>>, vector<8x32xf32>
    %c0_22 = arith.constant 0 : index
    %c0_23 = arith.constant 0 : index
    %17 = tpu.strided_load %arg1[%c0_22, %c0_23] {strides = array<i32: 2, 1>} : memref<16x32xf32, #tpu.memory_space<vmem>>, vector<8x32xf32>
    %c0_24 = arith.constant 0 : index
    %c0_25 = arith.constant 0 : index
    %18 = tpu.strided_load %arg2[%c0_24, %c0_25] {strides = array<i32: 2, 1>} : memref<16x32xf32, #tpu.memory_space<vmem>>, vector<8x32xf32>
    %cst = arith.constant dense<0.000000e+00> : vector<8x32xf32>
    %19 = tpu.matmul %16, %1, %cst {dimension_numbers = #tpu.dot_dimension_numbers<[1], [0], [0], [1], [0, 0, 1, 1], [], []>} : vector<8x32xf32>, vector<32x32xf32>, vector<8x32xf32> -> vector<8x32xf32>
    %20 = vector.broadcast %9 : vector<1x32xf32> to vector<8x32xf32>
    %21 = arith.addf %19, %20 : vector<8x32xf32>
    %cst_26 = arith.constant dense<0.000000e+00> : vector<8x32xf32>
    %22 = tpu.matmul %17, %3, %cst_26 {dimension_numbers = #tpu.dot_dimension_numbers<[1], [0], [0], [1], [0, 0, 1, 1], [], []>} : vector<8x32xf32>, vector<32x32xf32>, vector<8x32xf32> -> vector<8x32xf32>
    %23 = vector.broadcast %11 : vector<1x32xf32> to vector<8x32xf32>
    %24 = arith.addf %22, %23 : vector<8x32xf32>
    %cst_27 = arith.constant dense<0.000000e+00> : vector<8x32xf32>
    %25 = tpu.matmul %18, %5, %cst_27 {dimension_numbers = #tpu.dot_dimension_numbers<[1], [0], [0], [1], [0, 0, 1, 1], [], []>} : vector<8x32xf32>, vector<32x32xf32>, vector<8x32xf32> -> vector<8x32xf32>
    %26 = vector.broadcast %13 : vector<1x32xf32> to vector<8x32xf32>
    %27 = arith.addf %25, %26 : vector<8x32xf32>
    %28 = vector.extract_strided_slice %21 {offsets = [0, 0], sizes = [8, 8], strides = [1, 1]} : vector<8x32xf32> to vector<8x8xf32>
    %29 = vector.extract_strided_slice %24 {offsets = [0, 0], sizes = [8, 8], strides = [1, 1]} : vector<8x32xf32> to vector<8x8xf32>
    %30 = vector.extract_strided_slice %27 {offsets = [0, 0], sizes = [8, 8], strides = [1, 1]} : vector<8x32xf32> to vector<8x8xf32>
    %cst_28 = arith.constant dense<0.000000e+00> : vector<8x8xf32>
    %31 = tpu.matmul %28, %29, %cst_28 {dimension_numbers = #tpu.dot_dimension_numbers<[1], [1], [0], [0], [0, 0, 1, 0], [], []>} : vector<8x8xf32>, vector<8x8xf32>, vector<8x8xf32> -> vector<8x8xf32>
    %cst_29 = arith.constant dense<0xFF800000> : vector<8xf32>
    %32 = vector.multi_reduction <maximumf>, %31, %cst_29 [1] : vector<8x8xf32> to vector<8xf32>
    %33 = vector.shape_cast %32 : vector<8xf32> to vector<8x1xf32>
    %34 = vector.broadcast %33 : vector<8x1xf32> to vector<8x8xf32>
    %35 = arith.subf %31, %34 : vector<8x8xf32>
    %36 = math.exp %35 : vector<8x8xf32>
    %cst_30 = arith.constant dense<0.000000e+00> : vector<8xf32>
    %37 = vector.multi_reduction <add>, %36, %cst_30 [1] : vector<8x8xf32> to vector<8xf32>
    %38 = vector.shape_cast %37 : vector<8xf32> to vector<8x1xf32>
    %39 = vector.broadcast %38 : vector<8x1xf32> to vector<8x8xf32>
    %40 = arith.divf %36, %39 : vector<8x8xf32>
    %c0_31 = arith.constant 0 : index
    %c0_32 = arith.constant 0 : index
    %41 = vector.load %arg6[%c0_31, %c0_32] : memref<64x8xf32, #tpu.memory_space<vmem>>, vector<8x8xf32>
    tpu.vector_store %arg6[%c0_31, %c0_32], %40 {strides = array<i32>} : memref<64x8xf32, #tpu.memory_space<vmem>>, vector<8x8xf32>,
    %cst_33 = arith.constant dense<0.000000e+00> : vector<8x8xf32>
    %42 = tpu.matmul %40, %30, %cst_33 {dimension_numbers = #tpu.dot_dimension_numbers<[1], [0], [0], [1], [0, 0, 1, 1], [], []>} : vector<8x8xf32>, vector<8x8xf32>, vector<8x8xf32> -> vector<8x8xf32>
    %43 = vector.extract_strided_slice %7 {offsets = [0, 0], sizes = [8, 32], strides = [1, 1]} : vector<32x32xf32> to vector<8x32xf32>
    %cst_34 = arith.constant dense<0.000000e+00> : vector<8x32xf32>
    %44 = tpu.matmul %42, %43, %cst_34 {dimension_numbers = #tpu.dot_dimension_numbers<[1], [0], [0], [1], [0, 0, 1, 1], [], []>} : vector<8x8xf32>, vector<8x32xf32>, vector<8x32xf32> -> vector<8x32xf32>
    %45 = vector.extract_strided_slice %21 {offsets = [0, 8], sizes = [8, 8], strides = [1, 1]} : vector<8x32xf32> to vector<8x8xf32>
    %46 = vector.extract_strided_slice %24 {offsets = [0, 8], sizes = [8, 8], strides = [1, 1]} : vector<8x32xf32> to vector<8x8xf32>
    %47 = vector.extract_strided_slice %27 {offsets = [0, 8], sizes = [8, 8], strides = [1, 1]} : vector<8x32xf32> to vector<8x8xf32>
    %cst_35 = arith.constant dense<0.000000e+00> : vector<8x8xf32>
    %48 = tpu.matmul %45, %46, %cst_35 {dimension_numbers = #tpu.dot_dimension_numbers<[1], [1], [0], [0], [0, 0, 1, 0], [], []>} : vector<8x8xf32>, vector<8x8xf32>, vector<8x8xf32> -> vector<8x8xf32>
    %cst_36 = arith.constant dense<0xFF800000> : vector<8xf32>
    %49 = vector.multi_reduction <maximumf>, %48, %cst_36 [1] : vector<8x8xf32> to vector<8xf32>
    %50 = vector.shape_cast %49 : vector<8xf32> to vector<8x1xf32>
    %51 = vector.broadcast %50 : vector<8x1xf32> to vector<8x8xf32>
    %52 = arith.subf %48, %51 : vector<8x8xf32>
    %53 = math.exp %52 : vector<8x8xf32>
    %cst_37 = arith.constant dense<0.000000e+00> : vector<8xf32>
    %54 = vector.multi_reduction <add>, %53, %cst_37 [1] : vector<8x8xf32> to vector<8xf32>
    %55 = vector.shape_cast %54 : vector<8xf32> to vector<8x1xf32>
    %56 = vector.broadcast %55 : vector<8x1xf32> to vector<8x8xf32>
    %57 = arith.divf %53, %56 : vector<8x8xf32>
    %c8 = arith.constant 8 : index
    %c0_38 = arith.constant 0 : index
    %58 = vector.load %arg6[%c8, %c0_38] : memref<64x8xf32, #tpu.memory_space<vmem>>, vector<8x8xf32>
    tpu.vector_store %arg6[%c8, %c0_38], %57 {strides = array<i32>} : memref<64x8xf32, #tpu.memory_space<vmem>>, vector<8x8xf32>,
    %cst_39 = arith.constant dense<0.000000e+00> : vector<8x8xf32>
    %59 = tpu.matmul %57, %47, %cst_39 {dimension_numbers = #tpu.dot_dimension_numbers<[1], [0], [0], [1], [0, 0, 1, 1], [], []>} : vector<8x8xf32>, vector<8x8xf32>, vector<8x8xf32> -> vector<8x8xf32>
    %60 = vector.extract_strided_slice %7 {offsets = [8, 0], sizes = [8, 32], strides = [1, 1]} : vector<32x32xf32> to vector<8x32xf32>
    %cst_40 = arith.constant dense<0.000000e+00> : vector<8x32xf32>
    %61 = tpu.matmul %59, %60, %cst_40 {dimension_numbers = #tpu.dot_dimension_numbers<[1], [0], [0], [1], [0, 0, 1, 1], [], []>} : vector<8x8xf32>, vector<8x32xf32>, vector<8x32xf32> -> vector<8x32xf32>
    %62 = arith.addf %44, %61 : vector<8x32xf32>
    %63 = vector.extract_strided_slice %21 {offsets = [0, 16], sizes = [8, 8], strides = [1, 1]} : vector<8x32xf32> to vector<8x8xf32>
    %64 = vector.extract_strided_slice %24 {offsets = [0, 16], sizes = [8, 8], strides = [1, 1]} : vector<8x32xf32> to vector<8x8xf32>
    %65 = vector.extract_strided_slice %27 {offsets = [0, 16], sizes = [8, 8], strides = [1, 1]} : vector<8x32xf32> to vector<8x8xf32>
    %cst_41 = arith.constant dense<0.000000e+00> : vector<8x8xf32>
    %66 = tpu.matmul %63, %64, %cst_41 {dimension_numbers = #tpu.dot_dimension_numbers<[1], [1], [0], [0], [0, 0, 1, 0], [], []>} : vector<8x8xf32>, vector<8x8xf32>, vector<8x8xf32> -> vector<8x8xf32>
    %cst_42 = arith.constant dense<0xFF800000> : vector<8xf32>
    %67 = vector.multi_reduction <maximumf>, %66, %cst_42 [1] : vector<8x8xf32> to vector<8xf32>
    %68 = vector.shape_cast %67 : vector<8xf32> to vector<8x1xf32>
    %69 = vector.broadcast %68 : vector<8x1xf32> to vector<8x8xf32>
    %70 = arith.subf %66, %69 : vector<8x8xf32>
    %71 = math.exp %70 : vector<8x8xf32>
    %cst_43 = arith.constant dense<0.000000e+00> : vector<8xf32>
    %72 = vector.multi_reduction <add>, %71, %cst_43 [1] : vector<8x8xf32> to vector<8xf32>
    %73 = vector.shape_cast %72 : vector<8xf32> to vector<8x1xf32>
    %74 = vector.broadcast %73 : vector<8x1xf32> to vector<8x8xf32>
    %75 = arith.divf %71, %74 : vector<8x8xf32>
    %c16 = arith.constant 16 : index
    %c0_44 = arith.constant 0 : index
    %76 = vector.load %arg6[%c16, %c0_44] : memref<64x8xf32, #tpu.memory_space<vmem>>, vector<8x8xf32>
    tpu.vector_store %arg6[%c16, %c0_44], %75 {strides = array<i32>} : memref<64x8xf32, #tpu.memory_space<vmem>>, vector<8x8xf32>,
    %cst_45 = arith.constant dense<0.000000e+00> : vector<8x8xf32>
    %77 = tpu.matmul %75, %65, %cst_45 {dimension_numbers = #tpu.dot_dimension_numbers<[1], [0], [0], [1], [0, 0, 1, 1], [], []>} : vector<8x8xf32>, vector<8x8xf32>, vector<8x8xf32> -> vector<8x8xf32>
    %78 = vector.extract_strided_slice %7 {offsets = [16, 0], sizes = [8, 32], strides = [1, 1]} : vector<32x32xf32> to vector<8x32xf32>
    %cst_46 = arith.constant dense<0.000000e+00> : vector<8x32xf32>
    %79 = tpu.matmul %77, %78, %cst_46 {dimension_numbers = #tpu.dot_dimension_numbers<[1], [0], [0], [1], [0, 0, 1, 1], [], []>} : vector<8x8xf32>, vector<8x32xf32>, vector<8x32xf32> -> vector<8x32xf32>
    %80 = arith.addf %62, %79 : vector<8x32xf32>
    %81 = vector.extract_strided_slice %21 {offsets = [0, 24], sizes = [8, 8], strides = [1, 1]} : vector<8x32xf32> to vector<8x8xf32>
    %82 = vector.extract_strided_slice %24 {offsets = [0, 24], sizes = [8, 8], strides = [1, 1]} : vector<8x32xf32> to vector<8x8xf32>
    %83 = vector.extract_strided_slice %27 {offsets = [0, 24], sizes = [8, 8], strides = [1, 1]} : vector<8x32xf32> to vector<8x8xf32>
    %cst_47 = arith.constant dense<0.000000e+00> : vector<8x8xf32>
    %84 = tpu.matmul %81, %82, %cst_47 {dimension_numbers = #tpu.dot_dimension_numbers<[1], [1], [0], [0], [0, 0, 1, 0], [], []>} : vector<8x8xf32>, vector<8x8xf32>, vector<8x8xf32> -> vector<8x8xf32>
    %cst_48 = arith.constant dense<0xFF800000> : vector<8xf32>
    %85 = vector.multi_reduction <maximumf>, %84, %cst_48 [1] : vector<8x8xf32> to vector<8xf32>
    %86 = vector.shape_cast %85 : vector<8xf32> to vector<8x1xf32>
    %87 = vector.broadcast %86 : vector<8x1xf32> to vector<8x8xf32>
    %88 = arith.subf %84, %87 : vector<8x8xf32>
    %89 = math.exp %88 : vector<8x8xf32>
    %cst_49 = arith.constant dense<0.000000e+00> : vector<8xf32>
    %90 = vector.multi_reduction <add>, %89, %cst_49 [1] : vector<8x8xf32> to vector<8xf32>
    %91 = vector.shape_cast %90 : vector<8xf32> to vector<8x1xf32>
    %92 = vector.broadcast %91 : vector<8x1xf32> to vector<8x8xf32>
    %93 = arith.divf %89, %92 : vector<8x8xf32>
    %c24 = arith.constant 24 : index
    %c0_50 = arith.constant 0 : index
    %94 = vector.load %arg6[%c24, %c0_50] : memref<64x8xf32, #tpu.memory_space<vmem>>, vector<8x8xf32>
    tpu.vector_store %arg6[%c24, %c0_50], %93 {strides = array<i32>} : memref<64x8xf32, #tpu.memory_space<vmem>>, vector<8x8xf32>,
    %cst_51 = arith.constant dense<0.000000e+00> : vector<8x8xf32>
    %95 = tpu.matmul %93, %83, %cst_51 {dimension_numbers = #tpu.dot_dimension_numbers<[1], [0], [0], [1], [0, 0, 1, 1], [], []>} : vector<8x8xf32>, vector<8x8xf32>, vector<8x8xf32> -> vector<8x8xf32>
    %96 = vector.extract_strided_slice %7 {offsets = [24, 0], sizes = [8, 32], strides = [1, 1]} : vector<32x32xf32> to vector<8x32xf32>
    %cst_52 = arith.constant dense<0.000000e+00> : vector<8x32xf32>
    %97 = tpu.matmul %95, %96, %cst_52 {dimension_numbers = #tpu.dot_dimension_numbers<[1], [0], [0], [1], [0, 0, 1, 1], [], []>} : vector<8x8xf32>, vector<8x32xf32>, vector<8x32xf32> -> vector<8x32xf32>
    %98 = arith.addf %80, %97 : vector<8x32xf32>
    %99 = vector.broadcast %15 : vector<1x32xf32> to vector<8x32xf32>
    %100 = arith.addf %98, %99 : vector<8x32xf32>
    %c0_53 = arith.constant 0 : index
    %c0_54 = arith.constant 0 : index
    %101 = vector.load %arg5[%c0_53, %c0_54] : memref<16x32xf32, #tpu.memory_space<vmem>>, vector<8x32xf32>
    tpu.vector_store %arg5[%c0_53, %c0_54], %100 {strides = array<i32>} : memref<16x32xf32, #tpu.memory_space<vmem>>, vector<8x32xf32>,
    %c1_55 = arith.constant 1 : index
    %c0_56 = arith.constant 0 : index
    %102 = tpu.strided_load %arg0[%c1_55, %c0_56] {strides = array<i32: 2, 1>} : memref<16x32xf32, #tpu.memory_space<vmem>>, vector<8x32xf32>
    %c1_57 = arith.constant 1 : index
    %c0_58 = arith.constant 0 : index
    %103 = tpu.strided_load %arg1[%c1_57, %c0_58] {strides = array<i32: 2, 1>} : memref<16x32xf32, #tpu.memory_space<vmem>>, vector<8x32xf32>
    %c1_59 = arith.constant 1 : index
    %c0_60 = arith.constant 0 : index
    %104 = tpu.strided_load %arg2[%c1_59, %c0_60] {strides = array<i32: 2, 1>} : memref<16x32xf32, #tpu.memory_space<vmem>>, vector<8x32xf32>
    %cst_61 = arith.constant dense<0.000000e+00> : vector<8x32xf32>
    %105 = tpu.matmul %102, %1, %cst_61 {dimension_numbers = #tpu.dot_dimension_numbers<[1], [0], [0], [1], [0, 0, 1, 1], [], []>} : vector<8x32xf32>, vector<32x32xf32>, vector<8x32xf32> -> vector<8x32xf32>
    %106 = vector.broadcast %9 : vector<1x32xf32> to vector<8x32xf32>
    %107 = arith.addf %105, %106 : vector<8x32xf32>
    %cst_62 = arith.constant dense<0.000000e+00> : vector<8x32xf32>
    %108 = tpu.matmul %103, %3, %cst_62 {dimension_numbers = #tpu.dot_dimension_numbers<[1], [0], [0], [1], [0, 0, 1, 1], [], []>} : vector<8x32xf32>, vector<32x32xf32>, vector<8x32xf32> -> vector<8x32xf32>
    %109 = vector.broadcast %11 : vector<1x32xf32> to vector<8x32xf32>
    %110 = arith.addf %108, %109 : vector<8x32xf32>
    %cst_63 = arith.constant dense<0.000000e+00> : vector<8x32xf32>
    %111 = tpu.matmul %104, %5, %cst_63 {dimension_numbers = #tpu.dot_dimension_numbers<[1], [0], [0], [1], [0, 0, 1, 1], [], []>} : vector<8x32xf32>, vector<32x32xf32>, vector<8x32xf32> -> vector<8x32xf32>
    %112 = vector.broadcast %13 : vector<1x32xf32> to vector<8x32xf32>
    %113 = arith.addf %111, %112 : vector<8x32xf32>
    %114 = vector.extract_strided_slice %107 {offsets = [0, 0], sizes = [8, 8], strides = [1, 1]} : vector<8x32xf32> to vector<8x8xf32>
    %115 = vector.extract_strided_slice %110 {offsets = [0, 0], sizes = [8, 8], strides = [1, 1]} : vector<8x32xf32> to vector<8x8xf32>
    %116 = vector.extract_strided_slice %113 {offsets = [0, 0], sizes = [8, 8], strides = [1, 1]} : vector<8x32xf32> to vector<8x8xf32>
    %cst_64 = arith.constant dense<0.000000e+00> : vector<8x8xf32>
    %117 = tpu.matmul %114, %115, %cst_64 {dimension_numbers = #tpu.dot_dimension_numbers<[1], [1], [0], [0], [0, 0, 1, 0], [], []>} : vector<8x8xf32>, vector<8x8xf32>, vector<8x8xf32> -> vector<8x8xf32>
    %cst_65 = arith.constant dense<0xFF800000> : vector<8xf32>
    %118 = vector.multi_reduction <maximumf>, %117, %cst_65 [1] : vector<8x8xf32> to vector<8xf32>
    %119 = vector.shape_cast %118 : vector<8xf32> to vector<8x1xf32>
    %120 = vector.broadcast %119 : vector<8x1xf32> to vector<8x8xf32>
    %121 = arith.subf %117, %120 : vector<8x8xf32>
    %122 = math.exp %121 : vector<8x8xf32>
    %cst_66 = arith.constant dense<0.000000e+00> : vector<8xf32>
    %123 = vector.multi_reduction <add>, %122, %cst_66 [1] : vector<8x8xf32> to vector<8xf32>
    %124 = vector.shape_cast %123 : vector<8xf32> to vector<8x1xf32>
    %125 = vector.broadcast %124 : vector<8x1xf32> to vector<8x8xf32>
    %126 = arith.divf %122, %125 : vector<8x8xf32>
    %c32 = arith.constant 32 : index
    %c0_67 = arith.constant 0 : index
    %127 = vector.load %arg6[%c32, %c0_67] : memref<64x8xf32, #tpu.memory_space<vmem>>, vector<8x8xf32>
    tpu.vector_store %arg6[%c32, %c0_67], %126 {strides = array<i32>} : memref<64x8xf32, #tpu.memory_space<vmem>>, vector<8x8xf32>,
    %cst_68 = arith.constant dense<0.000000e+00> : vector<8x8xf32>
    %128 = tpu.matmul %126, %116, %cst_68 {dimension_numbers = #tpu.dot_dimension_numbers<[1], [0], [0], [1], [0, 0, 1, 1], [], []>} : vector<8x8xf32>, vector<8x8xf32>, vector<8x8xf32> -> vector<8x8xf32>
    %129 = vector.extract_strided_slice %7 {offsets = [0, 0], sizes = [8, 32], strides = [1, 1]} : vector<32x32xf32> to vector<8x32xf32>
    %cst_69 = arith.constant dense<0.000000e+00> : vector<8x32xf32>
    %130 = tpu.matmul %128, %129, %cst_69 {dimension_numbers = #tpu.dot_dimension_numbers<[1], [0], [0], [1], [0, 0, 1, 1], [], []>} : vector<8x8xf32>, vector<8x32xf32>, vector<8x32xf32> -> vector<8x32xf32>
    %131 = vector.extract_strided_slice %107 {offsets = [0, 8], sizes = [8, 8], strides = [1, 1]} : vector<8x32xf32> to vector<8x8xf32>
    %132 = vector.extract_strided_slice %110 {offsets = [0, 8], sizes = [8, 8], strides = [1, 1]} : vector<8x32xf32> to vector<8x8xf32>
    %133 = vector.extract_strided_slice %113 {offsets = [0, 8], sizes = [8, 8], strides = [1, 1]} : vector<8x32xf32> to vector<8x8xf32>
    %cst_70 = arith.constant dense<0.000000e+00> : vector<8x8xf32>
    %134 = tpu.matmul %131, %132, %cst_70 {dimension_numbers = #tpu.dot_dimension_numbers<[1], [1], [0], [0], [0, 0, 1, 0], [], []>} : vector<8x8xf32>, vector<8x8xf32>, vector<8x8xf32> -> vector<8x8xf32>
    %cst_71 = arith.constant dense<0xFF800000> : vector<8xf32>
    %135 = vector.multi_reduction <maximumf>, %134, %cst_71 [1] : vector<8x8xf32> to vector<8xf32>
    %136 = vector.shape_cast %135 : vector<8xf32> to vector<8x1xf32>
    %137 = vector.broadcast %136 : vector<8x1xf32> to vector<8x8xf32>
    %138 = arith.subf %134, %137 : vector<8x8xf32>
    %139 = math.exp %138 : vector<8x8xf32>
    %cst_72 = arith.constant dense<0.000000e+00> : vector<8xf32>
    %140 = vector.multi_reduction <add>, %139, %cst_72 [1] : vector<8x8xf32> to vector<8xf32>
    %141 = vector.shape_cast %140 : vector<8xf32> to vector<8x1xf32>
    %142 = vector.broadcast %141 : vector<8x1xf32> to vector<8x8xf32>
    %143 = arith.divf %139, %142 : vector<8x8xf32>
    %c40 = arith.constant 40 : index
    %c0_73 = arith.constant 0 : index
    %144 = vector.load %arg6[%c40, %c0_73] : memref<64x8xf32, #tpu.memory_space<vmem>>, vector<8x8xf32>
    tpu.vector_store %arg6[%c40, %c0_73], %143 {strides = array<i32>} : memref<64x8xf32, #tpu.memory_space<vmem>>, vector<8x8xf32>,
    %cst_74 = arith.constant dense<0.000000e+00> : vector<8x8xf32>
    %145 = tpu.matmul %143, %133, %cst_74 {dimension_numbers = #tpu.dot_dimension_numbers<[1], [0], [0], [1], [0, 0, 1, 1], [], []>} : vector<8x8xf32>, vector<8x8xf32>, vector<8x8xf32> -> vector<8x8xf32>
    %146 = vector.extract_strided_slice %7 {offsets = [8, 0], sizes = [8, 32], strides = [1, 1]} : vector<32x32xf32> to vector<8x32xf32>
    %cst_75 = arith.constant dense<0.000000e+00> : vector<8x32xf32>
    %147 = tpu.matmul %145, %146, %cst_75 {dimension_numbers = #tpu.dot_dimension_numbers<[1], [0], [0], [1], [0, 0, 1, 1], [], []>} : vector<8x8xf32>, vector<8x32xf32>, vector<8x32xf32> -> vector<8x32xf32>
    %148 = arith.addf %130, %147 : vector<8x32xf32>
    %149 = vector.extract_strided_slice %107 {offsets = [0, 16], sizes = [8, 8], strides = [1, 1]} : vector<8x32xf32> to vector<8x8xf32>
    %150 = vector.extract_strided_slice %110 {offsets = [0, 16], sizes = [8, 8], strides = [1, 1]} : vector<8x32xf32> to vector<8x8xf32>
    %151 = vector.extract_strided_slice %113 {offsets = [0, 16], sizes = [8, 8], strides = [1, 1]} : vector<8x32xf32> to vector<8x8xf32>
    %cst_76 = arith.constant dense<0.000000e+00> : vector<8x8xf32>
    %152 = tpu.matmul %149, %150, %cst_76 {dimension_numbers = #tpu.dot_dimension_numbers<[1], [1], [0], [0], [0, 0, 1, 0], [], []>} : vector<8x8xf32>, vector<8x8xf32>, vector<8x8xf32> -> vector<8x8xf32>
    %cst_77 = arith.constant dense<0xFF800000> : vector<8xf32>
    %153 = vector.multi_reduction <maximumf>, %152, %cst_77 [1] : vector<8x8xf32> to vector<8xf32>
    %154 = vector.shape_cast %153 : vector<8xf32> to vector<8x1xf32>
    %155 = vector.broadcast %154 : vector<8x1xf32> to vector<8x8xf32>
    %156 = arith.subf %152, %155 : vector<8x8xf32>
    %157 = math.exp %156 : vector<8x8xf32>
    %cst_78 = arith.constant dense<0.000000e+00> : vector<8xf32>
    %158 = vector.multi_reduction <add>, %157, %cst_78 [1] : vector<8x8xf32> to vector<8xf32>
    %159 = vector.shape_cast %158 : vector<8xf32> to vector<8x1xf32>
    %160 = vector.broadcast %159 : vector<8x1xf32> to vector<8x8xf32>
    %161 = arith.divf %157, %160 : vector<8x8xf32>
    %c48 = arith.constant 48 : index
    %c0_79 = arith.constant 0 : index
    %162 = vector.load %arg6[%c48, %c0_79] : memref<64x8xf32, #tpu.memory_space<vmem>>, vector<8x8xf32>
    tpu.vector_store %arg6[%c48, %c0_79], %161 {strides = array<i32>} : memref<64x8xf32, #tpu.memory_space<vmem>>, vector<8x8xf32>,
    %cst_80 = arith.constant dense<0.000000e+00> : vector<8x8xf32>
    %163 = tpu.matmul %161, %151, %cst_80 {dimension_numbers = #tpu.dot_dimension_numbers<[1], [0], [0], [1], [0, 0, 1, 1], [], []>} : vector<8x8xf32>, vector<8x8xf32>, vector<8x8xf32> -> vector<8x8xf32>
    %164 = vector.extract_strided_slice %7 {offsets = [16, 0], sizes = [8, 32], strides = [1, 1]} : vector<32x32xf32> to vector<8x32xf32>
    %cst_81 = arith.constant dense<0.000000e+00> : vector<8x32xf32>
    %165 = tpu.matmul %163, %164, %cst_81 {dimension_numbers = #tpu.dot_dimension_numbers<[1], [0], [0], [1], [0, 0, 1, 1], [], []>} : vector<8x8xf32>, vector<8x32xf32>, vector<8x32xf32> -> vector<8x32xf32>
    %166 = arith.addf %148, %165 : vector<8x32xf32>
    %167 = vector.extract_strided_slice %107 {offsets = [0, 24], sizes = [8, 8], strides = [1, 1]} : vector<8x32xf32> to vector<8x8xf32>
    %168 = vector.extract_strided_slice %110 {offsets = [0, 24], sizes = [8, 8], strides = [1, 1]} : vector<8x32xf32> to vector<8x8xf32>
    %169 = vector.extract_strided_slice %113 {offsets = [0, 24], sizes = [8, 8], strides = [1, 1]} : vector<8x32xf32> to vector<8x8xf32>
    %cst_82 = arith.constant dense<0.000000e+00> : vector<8x8xf32>
    %170 = tpu.matmul %167, %168, %cst_82 {dimension_numbers = #tpu.dot_dimension_numbers<[1], [1], [0], [0], [0, 0, 1, 0], [], []>} : vector<8x8xf32>, vector<8x8xf32>, vector<8x8xf32> -> vector<8x8xf32>
    %cst_83 = arith.constant dense<0xFF800000> : vector<8xf32>
    %171 = vector.multi_reduction <maximumf>, %170, %cst_83 [1] : vector<8x8xf32> to vector<8xf32>
    %172 = vector.shape_cast %171 : vector<8xf32> to vector<8x1xf32>
    %173 = vector.broadcast %172 : vector<8x1xf32> to vector<8x8xf32>
    %174 = arith.subf %170, %173 : vector<8x8xf32>
    %175 = math.exp %174 : vector<8x8xf32>
    %cst_84 = arith.constant dense<0.000000e+00> : vector<8xf32>
    %176 = vector.multi_reduction <add>, %175, %cst_84 [1] : vector<8x8xf32> to vector<8xf32>
    %177 = vector.shape_cast %176 : vector<8xf32> to vector<8x1xf32>
    %178 = vector.broadcast %177 : vector<8x1xf32> to vector<8x8xf32>
    %179 = arith.divf %175, %178 : vector<8x8xf32>
    %c56 = arith.constant 56 : index
    %c0_85 = arith.constant 0 : index
    %180 = vector.load %arg6[%c56, %c0_85] : memref<64x8xf32, #tpu.memory_space<vmem>>, vector<8x8xf32>
    tpu.vector_store %arg6[%c56, %c0_85], %179 {strides = array<i32>} : memref<64x8xf32, #tpu.memory_space<vmem>>, vector<8x8xf32>,
    %cst_86 = arith.constant dense<0.000000e+00> : vector<8x8xf32>
    %181 = tpu.matmul %179, %169, %cst_86 {dimension_numbers = #tpu.dot_dimension_numbers<[1], [0], [0], [1], [0, 0, 1, 1], [], []>} : vector<8x8xf32>, vector<8x8xf32>, vector<8x8xf32> -> vector<8x8xf32>
    %182 = vector.extract_strided_slice %7 {offsets = [24, 0], sizes = [8, 32], strides = [1, 1]} : vector<32x32xf32> to vector<8x32xf32>
    %cst_87 = arith.constant dense<0.000000e+00> : vector<8x32xf32>
    %183 = tpu.matmul %181, %182, %cst_87 {dimension_numbers = #tpu.dot_dimension_numbers<[1], [0], [0], [1], [0, 0, 1, 1], [], []>} : vector<8x8xf32>, vector<8x32xf32>, vector<8x32xf32> -> vector<8x32xf32>
    %184 = arith.addf %166, %183 : vector<8x32xf32>
    %185 = vector.broadcast %15 : vector<1x32xf32> to vector<8x32xf32>
    %186 = arith.addf %184, %185 : vector<8x32xf32>
    %c8_88 = arith.constant 8 : index
    %c0_89 = arith.constant 0 : index
    %187 = vector.load %arg5[%c8_88, %c0_89] : memref<16x32xf32, #tpu.memory_space<vmem>>, vector<8x32xf32>
    tpu.vector_store %arg5[%c8_88, %c0_89], %186 {strides = array<i32>} : memref<16x32xf32, #tpu.memory_space<vmem>>, vector<8x32xf32>,
    return
  }
}

</mosaic_0001>

<bundles_post_ra>
// kernel: model_forward.1
= control target key start
LH: loop header
LB: loop body
LE: loop exit
PB: predicated region body
PF: predicated region fallthrough
CT: control target
= control target key end

     0   :  { %12 = vsyncpa [#allocation3], 0  ;;  %s3480_s0 = inlined_call_operand.vmem [shape: f32[16,32], index: 0, kind: input, shape index: {}]   ;;  %s3481_s1 = inlined_call_operand.hbm [shape: f32[16,32], index: 1, kind: input, shape index: {}]   ;;  %s3482_s2 = inlined_call_operand.hbm [shape: f32[16,32], index: 2, kind: input, shape index: {}]   ;;  %s3483_s3 = inlined_call_operand.hbm [shape: f32[4,32,32], index: 3, kind: input, shape index: {}]   ;;  %s3484_s4 = inlined_call_operand.hbm [shape: f32[4,1,32], index: 4, kind: input, shape index: {}]   ;;  %s3485_s5 = inlined_call_operand.hbm [shape: f32[16,32], index: 5, kind: output, shape index: {0}]   ;;  %s3486_s6 = inlined_call_operand.hbm [shape: f32[64,8], index: 6, kind: output, shape index: {1}]  }
   0x1   :  { %13 = vsyncpa [#allocation6], 0 }
   0x2   :  { %14 = vsyncpa [#allocation9], 0 }
   0x3   :  { %15 = vsyncpa [#allocation4], 0 }
   0x4   :  { %16 = vsyncpa [#allocation12], 0  ;;  %s3058_s21 = smov [#allocation5]   ;;  %s3059_s23 = smov [#allocation2]  }
   0x5   :  { %s36_s22 = sshll.u32 %s3058_s21, 4  ;;  %s24_s24 = sshll.u32 %s3059_s23, 4  ;;  %s37_s22 = int_to_ptr.vmem [resolvable:$true] %s36_s22  ;;  %s3109_s24 = int_to_ptr.vmem [resolvable:$true] %s24_s24 }
   0x6   :  { %s2916_s27 = scalar_lea.hbm %s3482_s2, 256 }
   0x7   :  { %p2917_p0 = scmp.ne.s32.totalorder %s3482_s2, %s2916_s27  ;;  %p2920_p1 = scmp.lt.u32.totalorder %s2916_s27, %s3482_s2 }
   0x9   :  { %p2922_p2 = pnand %p2920_p1, %p2917_p0 }
   0xb   :  { %2925 = shalt.err (!%p2922_p2)
}
   0xc   :  { %s2926_s8 = scalar_lea.vmem %s37_s22, 256  ;;  %p2931_p4 = scmp.lt.s32.totalorder %s37_s22, %s37_s22 }
   0xd   :  { %p2927_p3 = scmp.ne.s32.totalorder %s37_s22, %s2926_s8  ;;  %p2932_p5 = scmp.lt.s32.totalorder %s2926_s8, %s2926_s8 }
   0xf   :  { %p2933_p6 = por %p2932_p5, %p2931_p4 }
  0x11   :  { %p2934_p7 = pnand %p2933_p6, %p2927_p3 }
  0x13   :  { %2937 = shalt.err (!%p2934_p7)
}
  0x14   :  { %s3060_s9 = smov 128   ;;  %s3061_s10 = smov 8  }
  0x15   :  { %42 = dma.hbm_to_vmem [thread:$0]  %s3482_s2, 256, %s37_s22, [#allocation6], %s3060_s9, %s3060_s9, %s3061_s10  }
  0x16   :  { %s2938_s15 = scalar_lea.hbm %s3481_s1, 256 }
  0x17   :  { %p2939_p8 = scmp.ne.s32.totalorder %s3481_s1, %s2938_s15  ;;  %p2942_p9 = scmp.lt.u32.totalorder %s2938_s15, %s3481_s1 }
  0x19   :  { %p2944_p10 = pnand %p2942_p9, %p2939_p8 }
  0x1b   :  { %2947 = shalt.err (!%p2944_p10)
}
  0x1c   :  { %s2948_s20 = scalar_lea.vmem %s3109_s24, 256  ;;  %p2953_p12 = scmp.lt.s32.totalorder %s3109_s24, %s3109_s24 }
  0x1d   :  { %p2949_p11 = scmp.ne.s32.totalorder %s3109_s24, %s2948_s20  ;;  %p2954_p13 = scmp.lt.s32.totalorder %s2948_s20, %s2948_s20 }
  0x1f   :  { %p2955_p0 = por %p2954_p13, %p2953_p12 }
  0x21   :  { %p2956_p1 = pnand %p2955_p0, %p2949_p11 }
  0x23   :  { %2959 = shalt.err (!%p2956_p1)
}
  0x24   :  { %30 = dma.hbm_to_vmem [thread:$0]  %s3481_s1, 256, %s3109_s24, [#allocation3], %s3060_s9, %s3060_s9, %s3061_s10  }
  0x25   :  { %s3062_s22 = smov [#allocation7]   ;;  %s3063_s25 = smov [#allocation8]  }
  0x26   :  { %s48_s23 = sshll.u32 %s3062_s22, 4  ;;  %s60_s26 = sshll.u32 %s3063_s25, 4  ;;  %s49_s23 = int_to_ptr.vmem [resolvable:$true] %s48_s23  ;;  %s3146_s26 = int_to_ptr.vmem [resolvable:$true] %s60_s26 }
  0x27   :  { %s2960_s29 = scalar_lea.hbm %s3483_s3, 2048 }
  0x28   :  { %p2961_p2 = scmp.ne.s32.totalorder %s3483_s3, %s2960_s29  ;;  %p2964_p3 = scmp.lt.u32.totalorder %s2960_s29, %s3483_s3 }
  0x2a   :  { %p2966_p4 = pnand %p2964_p3, %p2961_p2 }
  0x2c   :  { %2969 = shalt.err (!%p2966_p4)
}
  0x2d   :  { %s2970_s1 = scalar_lea.vmem %s49_s23, 2048  ;;  %p2975_p6 = scmp.lt.s32.totalorder %s49_s23, %s49_s23 }
  0x2e   :  { %p2971_p5 = scmp.ne.s32.totalorder %s49_s23, %s2970_s1  ;;  %p2976_p7 = scmp.lt.s32.totalorder %s2970_s1, %s2970_s1 }
  0x30   :  { %p2977_p8 = por %p2976_p7, %p2975_p6 }
  0x32   :  { %p2978_p9 = pnand %p2977_p8, %p2971_p5 }
  0x34   :  { %2981 = shalt.err (!%p2978_p9)
}
  0x35   :  { %54 = dma.hbm_to_vmem [thread:$0]  %s3483_s3, 2048, %s49_s23, [#allocation6], %s3060_s9, %s3060_s9, %s3061_s10  }
  0x36   :  { %s2982_s15 = scalar_lea.hbm %s3484_s4, 64 }
  0x37   :  { %p2983_p10 = scmp.ne.s32.totalorder %s3484_s4, %s2982_s15  ;;  %p2986_p11 = scmp.lt.u32.totalorder %s2982_s15, %s3484_s4 }
  0x39   :  { %p2988_p12 = pnand %p2986_p11, %p2983_p10 }
  0x3b   :  { %2991 = shalt.err (!%p2988_p12)
}
  0x3c   :  { %s2992_s20 = scalar_lea.vmem %s3146_s26, 64  ;;  %p2997_p0 = scmp.lt.s32.totalorder %s3146_s26, %s3146_s26 }
  0x3d   :  { %p2993_p13 = scmp.ne.s32.totalorder %s3146_s26, %s2992_s20  ;;  %p2998_p1 = scmp.lt.s32.totalorder %s2992_s20, %s2992_s20 }
  0x3f   :  { %p2999_p2 = por %p2998_p1, %p2997_p0 }
  0x41   :  { %p3000_p3 = pnand %p2999_p2, %p2993_p13 }
  0x43   :  { %3003 = shalt.err (!%p3000_p3)
}
  0x44   :  { %s3064_s3 = smov 16   ;;  %s3065_s2 = smov 1  }
  0x45   :  { %66 = dma.hbm_to_vmem [thread:$0]  %s3484_s4, 64, %s3146_s26, [#allocation9], %s3064_s3, %s3064_s3, %s3065_s2  }
  0x46   :  { %3048 = dma.done.wait [#allocation3], 256  }
  0x47   :  { %3049 = vsyncadd [#allocation3], 4294967040 }
  0x48   :  { %3050 = dma.done.wait [#allocation6], 2304  }
  0x49   :  { %3051 = vsyncadd [#allocation6], 4294964992 }
  0x4a   :  { %3052 = dma.done.wait [#allocation9], 64  }
  0x4b   :  { %3053 = vsyncadd [#allocation9], 4294967232  ;;  %v3066_v0 = vmov 0.0|0.0   ;;  %vm3067_vm0 = vmmov 0   ;;  %v3068_v1 = vmov 0.0   ;;  %v84_v2 = vld [vmem:[#allocation7 + $0x20] sm:$0xff] }
  0x4c   :  { %2838 = vmatprep.subr.bf16.mxu1 %v3066_v0  ;;  %2832 = vmatprep.subr.bf16.mxu0 %v3066_v0  ;;  %v85_v3 = vld [vmem:[#allocation7 + $0x28] sm:$0xff]  ;;  %v79_v4 = vld [vmem:[#allocation7] sm:$0xff]  ;;  %v86_v7 = vld [vmem:[#allocation7 + $0x30] sm:$0xff]  ;;  %vm114_vm1 = vcmask 261120   ;;  %vm346_vm2 = vcmask 64512   ;;  %s3069_s25 = smov 120  }
  0x4d   :  { %2665 = vmatprep.mubr.msk.f32.mxu1 %vm3067_vm0, %v3068_v1  ;;  %2654 = vmatprep.mubr.msk.f32.mxu0 %vm3067_vm0, %v3068_v1  ;;  %v3186_v5 = vpack.c.bf16 %v85_v3, %v84_v2  ;;  %v80_v6 = vld [vmem:[#allocation7 + $0x8] sm:$0xff]  ;;  %v87_v8 = vld [vmem:[#allocation7 + $0x38] sm:$0xff]  ;;  %v81_v10 = vld [vmem:[#allocation7 + $0x10] sm:$0xff]  ;;  %s3070_s26 = smov 112   ;;  %s3071_s27 = smov 104  }
  0x4e   :  { %v3188_v9 = vpack.c.bf16 %v80_v6, %v79_v4  ;;  %v82_v11 = vld [vmem:[#allocation7 + $0x18] sm:$0xff]  ;;  %v3191_v12 = vpack.c.bf16 %v87_v8, %v86_v7  ;;  %v106_v14 = vld [vmem:[#allocation2] ss:$2 sm:$0xff]  ;;  %v91_v18 = vld [vmem:[#allocation7 + $0x50] sm:$0xff] }
  0x4f   :  { %2840 = vmatpush3.bf16.msra.mxu1 %v3186_v5  ;;  %v3195_v13 = vpack.c.bf16 %v82_v11, %v81_v10  ;;  %v105_v15 = vld [vmem:[%s3480_s0] ss:$2 sm:$0xff]  ;;  %v92_v20 = vld [vmem:[#allocation7 + $0x58] sm:$0xff]  ;;  %v3222_v23 = vld [vmem:[#allocation8 + $0x1] ss:$0 sm:$0xff] }
  0x50   :  { %2834 = vmatpush3.bf16.msra.mxu0 %v3188_v9  ;;  %2841 = vmatprep.subr.bf16.mxu1 %v3066_v0  ;;  %v89_v16 = vld [vmem:[#allocation7 + $0x40] sm:$0xff]  ;;  %v90_v17 = vld [vmem:[#allocation7 + $0x48] sm:$0xff]  ;;  %v3214_v21 = vpack.c.bf16 %v92_v20, %v91_v18  ;;  %v107_v22 = vld [vmem:[#allocation5] ss:$2 sm:$0xff] }
  0x51   :  { %2835 = vmatprep.subr.bf16.mxu0 %v3066_v0  ;;  %v3211_v19 = vpack.c.bf16 %v90_v17, %v89_v16  ;;  %v3224_v24 = vld [vmem:[#allocation8] ss:$0 sm:$0xff]  ;;  %v3244_v33 = vld [vmem:[#allocation8 + $0x2] ss:$0 sm:$0xff]  ;;  %v3267_v56 = vld [vmem:[#allocation7 + $0x68] sm:$0xff] }
  0x52   :  { %v3272_v61 = vld [vmem:[#allocation7 + $0x60] sm:$0xff] }
  0x53   :  { %2843 = vmatpush3.bf16.msra.mxu1 %v3191_v12 }
  0x54   :  { %2837 = vmatpush3.bf16.msra.mxu0 %v3195_v13  ;;  %2679 = vmatprep.subr.mxu1 %v3068_v1 }
  0x55   :  { %2844 = vmatprep.subr.bf16.mxu0 %v3066_v0 }
  0x56   :  { %2666 = vmatmul.mubr.msk.f32.vlgmr.msra.gmra.mrb[0].mxu1 %vm114_vm1, %v106_v14 }
  0x57   :  { %2655 = vmatmul.mubr.msk.f32.vlgmr.msra.gmra.mrb[0].mxu0 %vm114_vm1, %v105_v15  ;;  %2681 = vmatprep.mubr.msk.f32.mxu1 %vm3067_vm0, %v3068_v1 }
  0x58   :  { %2676 = vmatprep.mubr.msk.f32.mxu0 %vm3067_vm0, %v3068_v1  ;;  %2846 = vmatpush3.bf16.msra.mxu0 %v3211_v19 }
  0x59   :  { %2847 = vmatprep.subr.bf16.mxu0 %v3066_v0 }
  0x5c   :  { %2849 = vmatpush3.bf16.msra.mxu0 %v3214_v21 }
  0x5d   :  { %2689 = vmatprep.subr.mxu0 %v3068_v1 }
  0x5f   :  { %2677 = vmatmul.mubr.msk.f32.vlgmr.msra.gmra.mrb[2].mxu0 %vm114_vm1, %v107_v22 }
  0x60   :  { %2691 = vmatprep.mubr.msk.f32.mxu0 %vm3067_vm0, %v3068_v1 }
 0x129   :  { %v263_v25 = vpop.f32.mrb[0].mxu1 }
 0x12a   :  { %v264_v26 = vadd.f32 %v3222_v23, %v263_v25  ;;  %v2667_v27 = vpop.f32.mrb[1].mxu1  ;;  %v184_v28 = vpop.f32.mrb[0].mxu0 }
 0x12b   :  { %v3228_v29 = vadd.f32 %v3224_v24, %v184_v28  ;;  %v2656_v30 = vpop.f32.mrb[1].mxu0 }
 0x12c   :  { %510 = vrot.lane.b32.xlu0 %v264_v26, %s3069_s25  ;;  %2680 = vmatpush3.xpose.msk.msra.mxu1 %vm346_vm2, %v264_v26 }
 0x12d   :  { %2684 = vmatprep.subr.mxu1 %v3068_v1 }
 0x12f   :  { %2682 = vmatmul.mubr.msk.f32.vlgmr.msra.gmra.mrb[2].mxu1 %vm346_vm2, %v3228_v29 }
 0x130   :  { %508 = vrot.lane.b32.xlu0 %v3228_v29, %s3069_s25  ;;  %2686 = vmatprep.mubr.msk.f32.mxu1 %vm3067_vm0, %v3068_v1 }
 0x132   :  { %v342_v34 = vpop.f32.mrb[2].mxu0 }
 0x133   :  { %v3247_v35 = vadd.f32 %v3244_v33, %v342_v34  ;;  %v2678_v36 = vpop.f32.mrb[3].mxu0 }
 0x135   :  { %2685 = vmatpush3.msra.mxu1 %v3247_v35 }
 0x136   :  { %2694 = vmatprep.subr.mxu1 %v3068_v1 }
 0x19e   :  { %v511_v31 = vpop.permute.xlu0 %510 }
 0x19f   :  { %2690 = vmatpush3.xpose.msk.msra.mxu0 %vm346_vm2, %v511_v31 }
 0x1a0   :  { %2699 = vmatprep.subr.mxu0 %v3068_v1 }
 0x1a2   :  { %v509_v32 = vpop.permute.xlu0 %508 }
 0x1a3   :  { %2692 = vmatmul.mubr.msk.f32.vlgmr.msra.gmra.mrb[4].mxu0 %vm346_vm2, %v509_v32 }
 0x1a4   :  { %2701 = vmatprep.mubr.msk.f32.mxu0 %vm3067_vm0, %v3068_v1  ;;  %2700 = vmatpush3.msra.mxu0 %v3267_v56 }
 0x1a5   :  { %2709 = vmatprep.subr.mxu0 %v3068_v1 }
 0x202   :  { %v419_v37 = vpop.f32.mrb[2].mxu1 }
 0x203   :  { %v2683_v38 = vpop.f32.mrb[3].mxu1  ;;  %v423_v39 = vsel %vm346_vm2, %v419_v37, -inf }
 0x204   :  { %424 = vmax.xlane.f32.xlu1 %v423_v39 }
 0x276   :  { %v582_v40 = vpop.f32.mrb[4].mxu0 }
 0x277   :  { %v2693_v41 = vpop.f32.mrb[5].mxu0  ;;  %v586_v42 = vsel %vm346_vm2, %v582_v40, -inf }
 0x278   :  { %587 = vmax.xlane.f32.xlu1 %v586_v42 }
 0x291   :  { %v425_v43 = vpop.xlane.xlu1 %424 }
 0x292   :  { %v426_v44 = vsub.f32 %v419_v37, %v425_v43 }
 0x294   :  { %v427_v45 = vmul.f32 1.442695, %v426_v44 }
 0x296   :  { %2884 = vpow2.f32 %v427_v45 }
 0x2a0   :  { %v2885_v46 = vpop.eup %2884 }
 0x2a1   :  { %v429_v47 = vsel %vm346_vm2, %v2885_v46, 0.0 }
 0x2a2   :  { %430 = vadd.xlane.f32.xlu0 %v429_v47 }
 0x2b8   :  { %911 = vrot.lane.b32.xlu0 %v3247_v35, %s3070_s26 }
 0x2bc   :  { %1063 = vrot.lane.b32.xlu0 %v264_v26, %s3071_s27 }
 0x305   :  { %v588_v48 = vpop.xlane.xlu1 %587 }
 0x306   :  { %v589_v49 = vsub.f32 %v582_v40, %v588_v48 }
 0x308   :  { %v590_v50 = vmul.f32 1.442695, %v589_v49 }
 0x30a   :  { %2886 = vpow2.f32 %v590_v50 }
 0x314   :  { %v2887_v51 = vpop.eup %2886 }
 0x315   :  { %v592_v52 = vsel %vm346_vm2, %v2887_v51, 0.0 }
 0x316   :  { %593 = vadd.xlane.f32.xlu1 %v592_v52 }
 0x327   :  { %599 = vrot.lane.b32.xlu1 %v3247_v35, %s3069_s25 }
 0x32b   :  { %823 = vrot.lane.b32.xlu1 %v264_v26, %s3070_s26 }
 0x32f   :  { %v431_v53 = vpop.xlane.xlu0 %430  ;;  %821 = vrot.lane.b32.xlu1 %v3228_v29, %s3070_s26 }
 0x330   :  { %2888 = vrcp.f32 %v431_v53 }
 0x333   :  { %v912_v63 = vpop.permute.xlu0 %911 }
 0x337   :  { %v1064_v28 = vpop.permute.xlu0 %1063 }
 0x33a   :  { %v2889_v54 = vpop.eup %2888 }
 0x33b   :  { %v433_v55 = vmul.f32 %v2889_v54, %v2885_v46  ;;  %v3316_v46 = vld [vmem:[#allocation7 + $0x78] sm:$0xff] }
 0x33d   :  { %434 = vst.msk [vmem:[#allocation11] sm:$0xff] %vm346_vm2, %v433_v55  ;;  %2687 = vmatmul.mubr.msk.f32.vlgmr.msra.gmra.mrb[4].mxu1 %vm346_vm2, %v433_v55  ;;  %v1314_v55 = vld [vmem:[#allocation5 + $0x1] ss:$2 sm:$0xff] }
 0x33e   :  { %2696 = vmatprep.mubr.msk.f32.mxu1 %vm3067_vm0, %v3068_v1 }
 0x3a3   :  { %v594_v57 = vpop.xlane.xlu1 %593 }
 0x3a4   :  { %2890 = vrcp.f32 %v594_v57 }
 0x3a7   :  { %v600_v58 = vpop.permute.xlu1 %599 }
 0x3a8   :  { %2695 = vmatpush3.msra.mxu1 %v600_v58 }
 0x3a9   :  { %2704 = vmatprep.subr.mxu1 %v3068_v1 }
 0x3ab   :  { %v824_v3 = vpop.permute.xlu1 %823 }
 0x3ae   :  { %v2891_v59 = vpop.eup %2890 }
 0x3af   :  { %v596_v60 = vmul.f32 %v2891_v59, %v2887_v51  ;;  %v822_v7 = vpop.permute.xlu1 %821 }
 0x3b1   :  { %597 = vst.msk [vmem:[#allocation11 + $0x8] sm:$0xff] %vm346_vm2, %v596_v60  ;;  %2697 = vmatmul.mubr.msk.f32.vlgmr.msra.gmra.mrb[6].mxu1 %vm346_vm2, %v596_v60 }
 0x3b2   :  { %2705 = vmatpush3.msra.mxu1 %v3272_v61  ;;  %2706 = vmatprep.mubr.msk.f32.mxu1 %vm3067_vm0, %v3068_v1 }
 0x3b3   :  { %2714 = vmatprep.subr.mxu1 %v3068_v1 }
 0x410   :  { %v504_v62 = vpop.f32.mrb[4].mxu1 }
 0x411   :  { %v2688_v2 = vpop.f32.mrb[5].mxu1  ;;  %2707 = vmatmul.mubr.msk.f32.vlgmr.msra.gmra.mrb[8].mxu1 %vm346_vm2, %v504_v62 }
 0x412   :  { %2715 = vmatpush3.msra.mxu1 %v912_v63  ;;  %2716 = vmatprep.mubr.msk.f32.mxu1 %vm3067_vm0, %v3068_v1 }
 0x413   :  { %2724 = vmatprep.subr.mxu1 %v3068_v1 }
 0x484   :  { %v671_v4 = vpop.f32.mrb[6].mxu1 }
 0x485   :  { %v2698_v6 = vpop.f32.mrb[7].mxu1  ;;  %2702 = vmatmul.mubr.msk.f32.vlgmr.msra.gmra.mrb[6].mxu0 %vm346_vm2, %v671_v4 }
 0x486   :  { %2710 = vmatpush3.xpose.msk.msra.mxu0 %vm346_vm2, %v824_v3  ;;  %2711 = vmatprep.mubr.msk.f32.mxu0 %vm3067_vm0, %v3068_v1 }
 0x487   :  { %2719 = vmatprep.subr.mxu0 %v3068_v1 }
 0x489   :  { %2712 = vmatmul.mubr.msk.f32.vlgmr.msra.gmra.mrb[8].mxu0 %vm346_vm2, %v822_v7 }
 0x48a   :  { %2721 = vmatprep.mubr.msk.f32.mxu0 %vm3067_vm0, %v3068_v1 }
 0x4e4   :  { %v817_v8 = vpop.f32.mrb[8].mxu1 }
 0x4e5   :  { %v2708_v10 = vpop.f32.mrb[9].mxu1 }
 0x558   :  { %v744_v11 = vpop.f32.mrb[6].mxu0 }
 0x559   :  { %v818_v14 = vadd.f32 %v817_v8, %v744_v11  ;;  %v2703_v15 = vpop.f32.mrb[7].mxu0 }
 0x55c   :  { %v895_v16 = vpop.f32.mrb[8].mxu0 }
 0x55d   :  { %v2713_v17 = vpop.f32.mrb[9].mxu0  ;;  %v899_v18 = vsel %vm346_vm2, %v895_v16, -inf }
 0x55e   :  { %900 = vmax.xlane.f32.xlu1 %v899_v18 }
 0x5eb   :  { %v901_v20 = vpop.xlane.xlu1 %900 }
 0x5ec   :  { %v902_v22 = vsub.f32 %v895_v16, %v901_v20 }
 0x5ee   :  { %v903_v25 = vmul.f32 1.442695, %v902_v22 }
 0x5f0   :  { %2892 = vpow2.f32 %v903_v25 }
 0x5fa   :  { %v2893_v26 = vpop.eup %2892 }
 0x5fb   :  { %v905_v27 = vsel %vm346_vm2, %v2893_v26, 0.0 }
 0x5fc   :  { %906 = vadd.xlane.f32.xlu0 %v905_v27 }
 0x612   :  { %1061 = vrot.lane.b32.xlu0 %v3228_v29, %s3071_s27  ;;  %v3305_v29 = vld [vmem:[#allocation7 + $0x70] sm:$0xff] }
 0x613   :  { %2720 = vmatpush3.msra.mxu0 %v3305_v29 }
 0x614   :  { %2729 = vmatprep.subr.mxu0 %v3068_v1 }
 0x689   :  { %v907_v30 = vpop.xlane.xlu0 %906 }
 0x68a   :  { %2894 = vrcp.f32 %v907_v30 }
 0x68d   :  { %v1062_v34 = vpop.permute.xlu0 %1061 }
 0x694   :  { %v2895_v31 = vpop.eup %2894 }
 0x695   :  { %v909_v32 = vmul.f32 %v2895_v31, %v2893_v26 }
 0x697   :  { %910 = vst.msk [vmem:[#allocation11 + $0x10] sm:$0xff] %vm346_vm2, %v909_v32  ;;  %2717 = vmatmul.mubr.msk.f32.vlgmr.msra.gmra.mrb[10].mxu1 %vm346_vm2, %v909_v32 }
 0x698   :  { %2725 = vmatpush3.xpose.msk.msra.mxu1 %vm346_vm2, %v1064_v28  ;;  %2726 = vmatprep.mubr.msk.f32.mxu1 %vm3067_vm0, %v3068_v1 }
 0x699   :  { %2734 = vmatprep.subr.mxu1 %v3068_v1 }
 0x69b   :  { %2727 = vmatmul.mubr.msk.f32.vlgmr.msra.gmra.mrb[12].mxu1 %vm346_vm2, %v1062_v34 }
 0x69c   :  { %2736 = vmatprep.mubr.msk.f32.mxu1 %vm3067_vm0, %v3068_v1  ;;  %2735 = vmatpush3.msra.mxu1 %v3316_v46 }
 0x69d   :  { %2856 = vmatprep.subr.bf16.mxu1 %v3066_v0 }
 0x76a   :  { %v983_v36 = vpop.f32.mrb[10].mxu1 }
 0x76b   :  { %v2718_v37 = vpop.f32.mrb[11].mxu1  ;;  %2722 = vmatmul.mubr.msk.f32.vlgmr.msra.gmra.mrb[10].mxu0 %vm346_vm2, %v983_v36 }
 0x76c   :  { %2731 = vmatprep.mubr.msk.f32.mxu0 %vm3067_vm0, %v3068_v1 }
 0x76e   :  { %v1135_v38 = vpop.f32.mrb[12].mxu1 }
 0x76f   :  { %v2728_v39 = vpop.f32.mrb[13].mxu1  ;;  %v1139_v40 = vsel %vm346_vm2, %v1135_v38, -inf }
 0x770   :  { %1140 = vmax.xlane.f32.xlu0 %v1139_v40 }
 0x7fd   :  { %v1141_v41 = vpop.xlane.xlu0 %1140 }
 0x7fe   :  { %v1142_v42 = vsub.f32 %v1135_v38, %v1141_v41 }
 0x800   :  { %v1143_v43 = vmul.f32 1.442695, %v1142_v42 }
 0x802   :  { %2896 = vpow2.f32 %v1143_v43 }
 0x80c   :  { %v2897_v44 = vpop.eup %2896 }
 0x80d   :  { %v1145_v45 = vsel %vm346_vm2, %v2897_v44, 0.0 }
 0x80e   :  { %1146 = vadd.xlane.f32.xlu1 %v1145_v45 }
 0x81f   :  { %1151 = vrot.lane.b32.xlu1 %v3247_v35, %s3071_s27  ;;  %v2548_v35 = vld [vmem:[%s3480_s0 + $0x1] ss:$2 sm:$0xff]  ;;  %s3072_s0 = smov [#allocation11]  }
 0x820   :  { %s2507_s30 = sshll.u32 %s3072_s0, 4  ;;  %s2508_s30 = int_to_ptr.vmem [resolvable:$true] %s2507_s30 }
 0x821   :  { %s3004_s7 = scalar_lea.vmem %s2508_s30, 1024  ;;  %p3009_p5 = scmp.lt.s32.totalorder %s2508_s30, %s2508_s30 }
 0x822   :  { %p3005_p4 = scmp.ne.s32.totalorder %s2508_s30, %s3004_s7  ;;  %p3010_p6 = scmp.lt.s32.totalorder %s3004_s7, %s3004_s7 }
 0x824   :  { %p3011_p7 = por %p3010_p6, %p3009_p5 }
 0x826   :  { %p3012_p8 = pnand %p3011_p7, %p3005_p4 }
 0x83e   :  { %v1056_v47 = vpop.f32.mrb[10].mxu0 }
 0x83f   :  { %v1060_v48 = vadd.f32 %v1056_v47, %v818_v14  ;;  %v2723_v49 = vpop.f32.mrb[11].mxu0 }
 0x89b   :  { %v1147_v50 = vpop.xlane.xlu1 %1146 }
 0x89c   :  { %2898 = vrcp.f32 %v1147_v50 }
 0x89f   :  { %v1152_v51 = vpop.permute.xlu1 %1151 }
 0x8a0   :  { %2730 = vmatpush3.msra.mxu0 %v1152_v51 }
 0x8a1   :  { %2850 = vmatprep.subr.bf16.mxu0 %v3066_v0 }
 0x8a6   :  { %v2899_v52 = vpop.eup %2898 }
 0x8a7   :  { %v1149_v53 = vmul.f32 %v2899_v52, %v2897_v44 }
 0x8a9   :  { %1150 = vst.msk [vmem:[#allocation11 + $0x18] sm:$0xff] %vm346_vm2, %v1149_v53  ;;  %2732 = vmatmul.mubr.msk.f32.vlgmr.msra.gmra.mrb[12].mxu0 %vm346_vm2, %v1149_v53 }
 0x8aa   :  { %2852 = vmatpush3.bf16.msra.mxu0 %v3188_v9  ;;  %2747 = vmatprep.mubr.msk.f32.mxu0 %vm3067_vm0, %v3068_v1 }
 0x8ab   :  { %2853 = vmatprep.subr.bf16.mxu0 %v3066_v0 }
 0x8ae   :  { %2855 = vmatpush3.bf16.msra.mxu0 %v3195_v13 }
 0x8af   :  { %2862 = vmatprep.subr.bf16.mxu0 %v3066_v0 }
 0x8b1   :  { %2748 = vmatmul.mubr.msk.f32.vlgmr.msra.gmra.mrb[14].mxu0 %vm114_vm1, %v2548_v35 }
 0x8b2   :  { %2864 = vmatpush3.bf16.msra.mxu0 %v3211_v19  ;;  %2769 = vmatprep.mubr.msk.f32.mxu0 %vm3067_vm0, %v3068_v1  ;;  %v1312_v19 = vld [vmem:[#allocation2 + $0x1] ss:$2 sm:$0xff] }
 0x8b3   :  { %2865 = vmatprep.subr.bf16.mxu0 %v3066_v0 }
 0x8b6   :  { %2867 = vmatpush3.bf16.msra.mxu0 %v3214_v21 }
 0x8b7   :  { %2782 = vmatprep.subr.mxu0 %v3068_v1 }
 0x8b9   :  { %2770 = vmatmul.mubr.msk.f32.vlgmr.msra.gmra.mrb[16].mxu0 %vm114_vm1, %v1314_v55 }
 0x8ba   :  { %2784 = vmatprep.mubr.msk.f32.mxu0 %vm3067_vm0, %v3068_v1 }
 0x97c   :  { %v1223_v9 = vpop.f32.mrb[12].mxu0 }
 0x97d   :  { %v2733_v13 = vpop.f32.mrb[13].mxu0  ;;  %2737 = vmatmul.mubr.msk.f32.vlgmr.msra.gmra.mrb[14].mxu1 %vm346_vm2, %v1223_v9 }
 0x97e   :  { %2858 = vmatpush3.bf16.msra.mxu1 %v3186_v5  ;;  %2758 = vmatprep.mubr.msk.f32.mxu1 %vm3067_vm0, %v3068_v1  ;;  %v3352_v5 = vld [vmem:[#allocation8 + $0x3] ss:$0 sm:$0xff] }
 0x97f   :  { %2859 = vmatprep.subr.bf16.mxu1 %v3066_v0 }
 0x982   :  { %2861 = vmatpush3.bf16.msra.mxu1 %v3191_v12 }
 0x983   :  { %2772 = vmatprep.subr.mxu1 %v3068_v1 }
 0x984   :  { %v1384_v21 = vpop.f32.mrb[14].mxu0 }
 0x985   :  { %2759 = vmatmul.mubr.msk.f32.vlgmr.msra.gmra.mrb[16].mxu1 %vm114_vm1, %v1312_v19  ;;  %v2749_v54 = vpop.f32.mrb[15].mxu0  ;;  %v3360_v63 = vadd.f32 %v3224_v24, %v1384_v21 }
 0x986   :  { %2774 = vmatprep.mubr.msk.f32.mxu1 %vm3067_vm0, %v3068_v1 }
 0xa50   :  { %v1296_v0 = vpop.f32.mrb[14].mxu1 }
 0xa51   :  { %v1300_v12 = vadd.f32 %v1296_v0, %v1060_v48  ;;  %v2738_v57 = vpop.f32.mrb[15].mxu1 }
 0xa53   :  { %v1307_v58 = vadd.f32 %v3352_v5, %v1300_v12 }
 0xa55   :  { %1308 = vst.msk [vmem:[#allocation10] sm:$0xff] %vm114_vm1, %v1307_v58 }
 0xa58   :  { %v1457_v59 = vpop.f32.mrb[16].mxu1 }
 0xa59   :  { %v3357_v60 = vadd.f32 %v3222_v23, %v1457_v59  ;;  %v2760_v62 = vpop.f32.mrb[17].mxu1  ;;  %v1530_v23 = vpop.f32.mrb[16].mxu0 }
 0xa5a   :  { %v3374_v24 = vadd.f32 %v3244_v33, %v1530_v23  ;;  %v2771_v2 = vpop.f32.mrb[17].mxu0 }
 0xa5b   :  { %1697 = vrot.lane.b32.xlu1 %v3357_v60, %s3069_s25  ;;  %2773 = vmatpush3.xpose.msk.msra.mxu1 %vm346_vm2, %v3357_v60 }
 0xa5c   :  { %2777 = vmatprep.subr.mxu1 %v3068_v1 }
 0xa5e   :  { %2775 = vmatmul.mubr.msk.f32.vlgmr.msra.gmra.mrb[18].mxu1 %vm346_vm2, %v3360_v63 }
 0xa5f   :  { %1695 = vrot.lane.b32.xlu1 %v3360_v63, %s3069_s25  ;;  %2779 = vmatprep.mubr.msk.f32.mxu1 %vm3067_vm0, %v3068_v1 }
 0xa60   :  { %2778 = vmatpush3.msra.mxu1 %v3374_v24 }
 0xa61   :  { %2787 = vmatprep.subr.mxu1 %v3068_v1 }
 0xacd   :  { %v1698_v3 = vpop.permute.xlu1 %1697 }
 0xace   :  { %2783 = vmatpush3.xpose.msk.msra.mxu0 %vm346_vm2, %v1698_v3 }
 0xacf   :  { %2792 = vmatprep.subr.mxu0 %v3068_v1 }
 0xad1   :  { %v1696_v4 = vpop.permute.xlu1 %1695 }
 0xad2   :  { %2785 = vmatmul.mubr.msk.f32.vlgmr.msra.gmra.mrb[18].mxu0 %vm346_vm2, %v1696_v4 }
 0xad3   :  { %2793 = vmatpush3.msra.mxu0 %v3267_v56  ;;  %2794 = vmatprep.mubr.msk.f32.mxu0 %vm3067_vm0, %v3068_v1 }
 0xad4   :  { %2802 = vmatprep.subr.mxu0 %v3068_v1 }
 0xb31   :  { %v1606_v33 = vpop.f32.mrb[18].mxu1 }
 0xb32   :  { %v2776_v6 = vpop.f32.mrb[19].mxu1  ;;  %v1610_v7 = vsel %vm346_vm2, %v1606_v33, -inf }
 0xb33   :  { %1611 = vmax.xlane.f32.xlu1 %v1610_v7 }
 0xb44   :  { %2008 = vrot.lane.b32.xlu1 %v3360_v63, %s3070_s26 }
 0xba5   :  { %v1769_v8 = vpop.f32.mrb[18].mxu0 }
 0xba6   :  { %v2786_v10 = vpop.f32.mrb[19].mxu0  ;;  %v1773_v11 = vsel %vm346_vm2, %v1769_v8, -inf }
 0xba7   :  { %1774 = vmax.xlane.f32.xlu0 %v1773_v11 }
 0xbc0   :  { %v1612_v14 = vpop.xlane.xlu1 %1611 }
 0xbc1   :  { %v1613_v56 = vsub.f32 %v1606_v33, %v1612_v14 }
 0xbc3   :  { %v1614_v15 = vmul.f32 1.442695, %v1613_v56 }
 0xbc5   :  { %2900 = vpow2.f32 %v1614_v15 }
 0xbcf   :  { %v2901_v16 = vpop.eup %2900 }
 0xbd0   :  { %v1616_v17 = vsel %vm346_vm2, %v2901_v16, 0.0 }
 0xbd1   :  { %1617 = vadd.xlane.f32.xlu0 %v1616_v17 }
 0xc34   :  { %v1775_v18 = vpop.xlane.xlu0 %1774 }
 0xc35   :  { %v1776_v20 = vsub.f32 %v1769_v8, %v1775_v18 }
 0xc37   :  { %v1777_v22 = vmul.f32 1.442695, %v1776_v20 }
 0xc39   :  { %2902 = vpow2.f32 %v1777_v22 }
 0xc43   :  { %v2903_v25 = vpop.eup %2902 }
 0xc44   :  { %v1779_v26 = vsel %vm346_vm2, %v2903_v25, 0.0 }
 0xc45   :  { %1780 = vadd.xlane.f32.xlu0 %v1779_v26 }
 0xc5b   :  { %1786 = vrot.lane.b32.xlu0 %v3374_v24, %s3069_s25 }
 0xc5e   :  { %v1618_v27 = vpop.xlane.xlu0 %1617 }
 0xc5f   :  { %2904 = vrcp.f32 %v1618_v27  ;;  %2010 = vrot.lane.b32.xlu0 %v3357_v60, %s3070_s26 }
 0xc69   :  { %v2905_v28 = vpop.eup %2904 }
 0xc6a   :  { %v1620_v30 = vmul.f32 %v2905_v28, %v2901_v16 }
 0xc6c   :  { %1621 = vst.msk [vmem:[#allocation11 + $0x20] sm:$0xff] %vm346_vm2, %v1620_v30  ;;  %2780 = vmatmul.mubr.msk.f32.vlgmr.msra.gmra.mrb[20].mxu1 %vm346_vm2, %v1620_v30 }
 0xc6d   :  { %2789 = vmatprep.mubr.msk.f32.mxu1 %vm3067_vm0, %v3068_v1 }
 0xcd2   :  { %v1781_v31 = vpop.xlane.xlu0 %1780 }
 0xcd3   :  { %2906 = vrcp.f32 %v1781_v31 }
 0xcd6   :  { %v1787_v32 = vpop.permute.xlu0 %1786 }
 0xcd7   :  { %2788 = vmatpush3.msra.mxu1 %v1787_v32 }
 0xcd8   :  { %2797 = vmatprep.subr.mxu1 %v3068_v1 }
 0xcda   :  { %v2011_v40 = vpop.permute.xlu0 %2010 }
 0xcdd   :  { %v2907_v34 = vpop.eup %2906 }
 0xcde   :  { %v1783_v36 = vmul.f32 %v2907_v34, %v2903_v25 }
 0xce0   :  { %1784 = vst.msk [vmem:[#allocation11 + $0x28] sm:$0xff] %vm346_vm2, %v1783_v36  ;;  %2790 = vmatmul.mubr.msk.f32.vlgmr.msra.gmra.mrb[22].mxu1 %vm346_vm2, %v1783_v36 }
 0xce1   :  { %2798 = vmatpush3.msra.mxu1 %v3272_v61  ;;  %2799 = vmatprep.mubr.msk.f32.mxu1 %vm3067_vm0, %v3068_v1  ;;  %v2009_v61 = vpop.permute.xlu1 %2008 }
 0xce2   :  { %2807 = vmatprep.subr.mxu1 %v3068_v1 }
 0xd3f   :  { %v1691_v37 = vpop.f32.mrb[20].mxu1 }
 0xd40   :  { %v2781_v38 = vpop.f32.mrb[21].mxu1  ;;  %2800 = vmatmul.mubr.msk.f32.vlgmr.msra.gmra.mrb[24].mxu1 %vm346_vm2, %v1691_v37 }
 0xd41   :  { %2809 = vmatprep.mubr.msk.f32.mxu1 %vm3067_vm0, %v3068_v1 }
 0xdb3   :  { %v1858_v39 = vpop.f32.mrb[22].mxu1 }
 0xdb4   :  { %v2791_v41 = vpop.f32.mrb[23].mxu1  ;;  %2795 = vmatmul.mubr.msk.f32.vlgmr.msra.gmra.mrb[20].mxu0 %vm346_vm2, %v1858_v39 }
 0xdb5   :  { %2803 = vmatpush3.xpose.msk.msra.mxu0 %vm346_vm2, %v2011_v40  ;;  %2804 = vmatprep.mubr.msk.f32.mxu0 %vm3067_vm0, %v3068_v1 }
 0xdb6   :  { %2812 = vmatprep.subr.mxu0 %v3068_v1 }
 0xdb8   :  { %2805 = vmatmul.mubr.msk.f32.vlgmr.msra.gmra.mrb[22].mxu0 %vm346_vm2, %v2009_v61 }
 0xdb9   :  { %2813 = vmatpush3.msra.mxu0 %v3305_v29  ;;  %2814 = vmatprep.mubr.msk.f32.mxu0 %vm3067_vm0, %v3068_v1 }
 0xdba   :  { %2822 = vmatprep.subr.mxu0 %v3068_v1 }
 0xe13   :  { %v2004_v42 = vpop.f32.mrb[24].mxu1 }
 0xe14   :  { %v2801_v43 = vpop.f32.mrb[25].mxu1 }
 0xe87   :  { %v1931_v44 = vpop.f32.mrb[20].mxu0 }
 0xe88   :  { %v2005_v45 = vadd.f32 %v2004_v42, %v1931_v44  ;;  %v2796_v47 = vpop.f32.mrb[21].mxu0 }
 0xe8b   :  { %v2082_v48 = vpop.f32.mrb[22].mxu0 }
 0xe8c   :  { %v2806_v49 = vpop.f32.mrb[23].mxu0  ;;  %v2086_v50 = vsel %vm346_vm2, %v2082_v48, -inf }
 0xe8d   :  { %2087 = vmax.xlane.f32.xlu0 %v2086_v50 }
 0xea3   :  { %2098 = vrot.lane.b32.xlu0 %v3374_v24, %s3070_s26 }
 0xea7   :  { %2248 = vrot.lane.b32.xlu0 %v3360_v63, %s3071_s27 }
 0xf1a   :  { %v2088_v29 = vpop.xlane.xlu0 %2087 }
 0xf1b   :  { %v2089_v51 = vsub.f32 %v2082_v48, %v2088_v29 }
 0xf1d   :  { %v2090_v52 = vmul.f32 1.442695, %v2089_v51 }
 0xf1e   :  { %v2099_v53 = vpop.permute.xlu0 %2098 }
 0xf1f   :  { %2908 = vpow2.f32 %v2090_v52  ;;  %2808 = vmatpush3.msra.mxu1 %v2099_v53 }
 0xf20   :  { %2817 = vmatprep.subr.mxu1 %v3068_v1 }
 0xf22   :  { %v2249_v55 = vpop.permute.xlu0 %2248 }
 0xf29   :  { %v2909_v35 = vpop.eup %2908 }
 0xf2a   :  { %v2092_v9 = vsel %vm346_vm2, %v2909_v35, 0.0 }
 0xf2b   :  { %2093 = vadd.xlane.f32.xlu1 %v2092_v9 }
 0xf3c   :  { %2250 = vrot.lane.b32.xlu1 %v3357_v60, %s3071_s27 }
 0xfb8   :  { %v2094_v13 = vpop.xlane.xlu1 %2093 }
 0xfb9   :  { %2910 = vrcp.f32 %v2094_v13 }
 0xfbc   :  { %v2251_v54 = vpop.permute.xlu1 %2250 }
 0xfc3   :  { %v2911_v19 = vpop.eup %2910 }
 0xfc4   :  { %v2096_v21 = vmul.f32 %v2911_v19, %v2909_v35 }
 0xfc6   :  { %2097 = vst.msk [vmem:[#allocation11 + $0x30] sm:$0xff] %vm346_vm2, %v2096_v21  ;;  %2810 = vmatmul.mubr.msk.f32.vlgmr.msra.gmra.mrb[26].mxu1 %vm346_vm2, %v2096_v21 }
 0xfc7   :  { %2818 = vmatpush3.xpose.msk.msra.mxu1 %vm346_vm2, %v2251_v54  ;;  %2819 = vmatprep.mubr.msk.f32.mxu1 %vm3067_vm0, %v3068_v1 }
 0xfc8   :  { %2827 = vmatprep.subr.mxu1 %v3068_v1 }
 0xfca   :  { %2820 = vmatmul.mubr.msk.f32.vlgmr.msra.gmra.mrb[28].mxu1 %vm346_vm2, %v2249_v55 }
 0xfcb   :  { %2828 = vmatpush3.msra.mxu1 %v3316_v46  ;;  %2829 = vmatprep.mubr.msk.f32.mxu1 %vm3067_vm0, %v3068_v1 }
0x1099   :  { %v2170_v0 = vpop.f32.mrb[26].mxu1 }
0x109a   :  { %v2811_v12 = vpop.f32.mrb[27].mxu1  ;;  %2815 = vmatmul.mubr.msk.f32.vlgmr.msra.gmra.mrb[24].mxu0 %vm346_vm2, %v2170_v0 }
0x109b   :  { %2824 = vmatprep.mubr.msk.f32.mxu0 %vm3067_vm0, %v3068_v1 }
0x109d   :  { %v2322_v57 = vpop.f32.mrb[28].mxu1 }
0x109e   :  { %v2821_v58 = vpop.f32.mrb[29].mxu1  ;;  %v2326_v59 = vsel %vm346_vm2, %v2322_v57, -inf }
0x109f   :  { %2327 = vmax.xlane.f32.xlu0 %v2326_v59 }
0x10b5   :  { %2338 = vrot.lane.b32.xlu0 %v3374_v24, %s3071_s27 }
0x112c   :  { %v2328_v60 = vpop.xlane.xlu0 %2327 }
0x112d   :  { %v2329_v46 = vsub.f32 %v2322_v57, %v2328_v60 }
0x112f   :  { %v2330_v62 = vmul.f32 1.442695, %v2329_v46 }
0x1130   :  { %v2339_v63 = vpop.permute.xlu0 %2338 }
0x1131   :  { %2912 = vpow2.f32 %v2330_v62  ;;  %2823 = vmatpush3.msra.mxu0 %v2339_v63 }
0x113b   :  { %v2913_v23 = vpop.eup %2912 }
0x113c   :  { %v2332_v2 = vsel %vm346_vm2, %v2913_v23, 0.0 }
0x113d   :  { %2333 = vadd.xlane.f32.xlu1 %v2332_v2 }
0x116d   :  { %v2243_v3 = vpop.f32.mrb[24].mxu0 }
0x116e   :  { %v2247_v1 = vadd.f32 %v2243_v3, %v2005_v45  ;;  %v2816_v4 = vpop.f32.mrb[25].mxu0 }
0x11ca   :  { %v2334_v33 = vpop.xlane.xlu1 %2333 }
0x11cb   :  { %2914 = vrcp.f32 %v2334_v33 }
0x11d5   :  { %v2915_v6 = vpop.eup %2914 }
0x11d6   :  { %v2336_v7 = vmul.f32 %v2915_v6, %v2913_v23 }
0x11d8   :  { %2337 = vst.msk [vmem:[#allocation11 + $0x38] sm:$0xff] %vm346_vm2, %v2336_v7  ;;  %2825 = vmatmul.mubr.msk.f32.vlgmr.msra.gmra.mrb[26].mxu0 %vm346_vm2, %v2336_v7 }
0x12ab   :  { %v2410_v24 = vpop.f32.mrb[26].mxu0 }
0x12ac   :  { %v2826_v8 = vpop.f32.mrb[27].mxu0  ;;  %2830 = vmatmul.mubr.msk.f32.vlgmr.msra.gmra.mrb[30].mxu1 %vm346_vm2, %v2410_v24 }
0x12ad   :  { %3015 = shalt.err (!%p3012_p8)
}
0x12ae   :  { %s3016_s1 = scalar_lea.hbm %s3486_s6, 1024 }
0x12af   :  { %p3017_p9 = scmp.ne.s32.totalorder %s3486_s6, %s3016_s1  ;;  %p3020_p10 = scmp.lt.u32.totalorder %s3016_s1, %s3486_s6 }
0x12b1   :  { %p3022_p11 = pnand %p3020_p10, %p3017_p9 }
0x12b3   :  { %3025 = shalt.err (!%p3022_p11)
}
0x12b4   :  { %2513 = dma.vmem_to_hbm [thread:$0]  %s2508_s30, 1024, %s3486_s6, [#allocation12], %s3060_s9, %s3060_s9, %s3061_s10  }
0x12b5   :  { %s3073_s17 = smov [#allocation10]  }
0x12b6   :  { %s2495_s18 = sshll.u32 %s3073_s17, 4  ;;  %s2496_s18 = int_to_ptr.vmem [resolvable:$true] %s2495_s18 }
0x12b7   :  { %s3026_s19 = scalar_lea.vmem %s2496_s18, 256  ;;  %p3031_p13 = scmp.lt.s32.totalorder %s2496_s18, %s2496_s18 }
0x12b8   :  { %p3027_p12 = scmp.ne.s32.totalorder %s2496_s18, %s3026_s19  ;;  %p3032_p0 = scmp.lt.s32.totalorder %s3026_s19, %s3026_s19 }
0x12ba   :  { %p3033_p1 = por %p3032_p0, %p3031_p13 }
0x12bc   :  { %p3034_p2 = pnand %p3033_p1, %p3027_p12 }
0x137f   :  { %v2483_v10 = vpop.f32.mrb[30].mxu1 }
0x1380   :  { %v2487_v11 = vadd.f32 %v2483_v10, %v2247_v1  ;;  %v2831_v14 = vpop.f32.mrb[31].mxu1 }
0x1382   :  { %v2488_v56 = vadd.f32 %v3352_v5, %v2487_v11 }
0x1384   :  { %2489 = vst.msk [vmem:[#allocation10 + $0x8] sm:$0xff] %vm114_vm1, %v2488_v56 }
0x1385   :  { %3037 = shalt.err (!%p3034_p2)
}
0x1386   :  { %s3038_s6 = scalar_lea.hbm %s3485_s5, 256 }
0x1387   :  { %p3039_p3 = scmp.ne.s32.totalorder %s3485_s5, %s3038_s6  ;;  %p3042_p4 = scmp.lt.u32.totalorder %s3038_s6, %s3485_s5 }
0x1389   :  { %p3044_p5 = pnand %p3042_p4, %p3039_p3 }
0x138b   :  { %3047 = shalt.err (!%p3044_p5)
}
0x138c   :  { %2501 = dma.vmem_to_hbm [thread:$0]  %s2496_s18, 256, %s3485_s5, [#allocation4], %s3060_s9, %s3060_s9, %s3061_s10  }
0x138d   :  { %3054 = dma.done.wait [#allocation4], 256  }
0x138e   :  { %3055 = vsyncadd [#allocation4], 4294967040 }
0x138f   :  { %3056 = dma.done.wait [#allocation12], 1024  }
0x1390   :  { %3057 = vsyncadd [#allocation12], 4294966272 }
0x1391   :  { %2520 = vsyncpa [#allocation3], 1 }
0x1392   :  { %2521 = vsyncpa [#allocation6], 1 }
0x1393   :  { %2522 = vsyncpa [#allocation9], 1 }
0x1394   :  { %2523 = vsyncpa [#allocation4], 1 }
0x1395   :  { %2524 = vsyncpa [#allocation12], 1 }

</bundles_post_ra>
